<compile_context>
chip_gen: v6e
topology: v6e:2x2x1
jax: 0.10.0
libtpu: 0.0.40
codegen_flags: <defaults>
</compile_context>

<pallas_src>
import functools

import jax
import jax.numpy as jnp
from jax.experimental import pallas as pl
from jax.experimental.pallas import tpu as pltpu


def _w2v_encoder_kernel(enc_ref, params_ref, out_ref, *, d_word, dw8, Dp, inv_B):
    # ---- max-pool over the sequence axis (XLU sublane reduction) ----
    x = enc_ref[...]                                    # (B, S, d_word) f32
    pooled = jnp.max(x, axis=1)                         # (B, d_word)

    # ---- unpack the parameter slab (static, 8-aligned ref slices) ----
    w1 = params_ref[0:d_word, :]                        # (d_word, Dp)
    w2 = params_ref[dw8:dw8 + Dp, :]                    # (Dp, Dp)
    vec = params_ref[dw8 + Dp:dw8 + Dp + 8, :]          # (8, Dp) one small load
    gamma = vec[0:1, :]
    beta = vec[1:2, :]
    b2 = vec[2:3, :]

    # ---- Linear1 (bias-free: b1 cancels under BN mean subtraction) ----
    h = jnp.dot(pooled, w1, preferred_element_type=jnp.float32)     # (B, Dp)

    # ---- BatchNorm1d, training-mode batch statistics (biased variance) ----
    # Zero-padded columns stay exactly zero: h==0 -> mean=0, var=0, norm=0.
    mean = jnp.sum(h, axis=0, keepdims=True) * inv_B                # (1, Dp)
    centered = h - mean
    var = jnp.sum(centered * centered, axis=0, keepdims=True) * inv_B
    h_bn = centered * jax.lax.rsqrt(var + 1e-5) * gamma + beta

    # ---- ReLU ----
    h_relu = jnp.maximum(h_bn, 0.0)

    # ---- Linear2 ----
    out = jnp.dot(h_relu, w2, preferred_element_type=jnp.float32) + b2

    out_ref[...] = out.astype(out_ref.dtype)


def word2vec_encoder(enc_seq, w1, b1, gamma, beta, w2, b2, *, lane=128, sublane=8):
    """enc_seq: (B, S, d_word); weights stored (in_features, out_features).

    b1 is accepted for parity with nn.Linear but is mathematically dead under
    training-mode BatchNorm and is not sent to the kernel.
    """
    del b1  # shift-invariant under BatchNorm's mean subtraction
    B, _, d_word = enc_seq.shape
    d_model = w1.shape[1]
    Dp = pl.cdiv(d_model, lane) * lane                  # lane-dense hidden width
    dw8 = pl.cdiv(d_word, sublane) * sublane            # sublane-aligned w1 rows
    pad_c = Dp - d_model

    # Build a single packed, lane-padded parameter slab (one DMA):
    #   rows [0, d_word)           : w1                (padded to dw8 rows)
    #   rows [dw8, dw8+Dp)         : w2                (padded to Dp x Dp)
    #   rows [dw8+Dp, dw8+Dp+8)    : gamma, beta, b2   (padded to 8 rows)
    w1p = jnp.pad(w1.astype(jnp.float32), ((0, dw8 - d_word), (0, pad_c)))
    w2p = jnp.pad(w2.astype(jnp.float32), ((0, Dp - d_model), (0, pad_c)))
    vecp = jnp.concatenate(
        [jnp.pad(gamma.reshape(1, d_model).astype(jnp.float32), ((0, 0), (0, pad_c))),
         jnp.pad(beta.reshape(1, d_model).astype(jnp.float32), ((0, 0), (0, pad_c))),
         jnp.pad(b2.reshape(1, d_model).astype(jnp.float32), ((0, 0), (0, pad_c)))],
        axis=0)
    vecp = jnp.pad(vecp, ((0, sublane - vecp.shape[0]), (0, 0)))     # -> (8, Dp)
    params = jnp.concatenate([w1p, w2p, vecp], axis=0)               # (dw8+Dp+8, Dp)

    kernel = functools.partial(_w2v_encoder_kernel,
                               d_word=d_word, dw8=dw8, Dp=Dp, inv_B=1.0 / B)

    vmem = pl.BlockSpec(memory_space=pltpu.MemorySpace.VMEM)
    out_padded = pl.pallas_call(
        kernel,
        out_shape=jax.ShapeDtypeStruct((B, Dp), jnp.float32),
        in_specs=[vmem, vmem],
        out_specs=vmem,
    )(enc_seq.astype(jnp.float32), params)

    return out_padded[:, :d_model]


def _reference(enc_seq, w1, b1, gamma, beta, w2, b2):
    pooled = jnp.max(enc_seq, axis=1)
    h = pooled @ w1 + b1
    mean = jnp.mean(h, axis=0, keepdims=True)
    var = jnp.mean((h - mean) ** 2, axis=0, keepdims=True)
    h = (h - mean) / jnp.sqrt(var + 1e-5) * gamma + beta
    h = jnp.maximum(h, 0.0)
    return h @ w2 + b2


if __name__ == "__main__":
    # Small shapes consistent with the module: batch=2, seq=8, d_word=32, d_model=32
    B, S, d_word, d_model = 2, 8, 32, 32

    key = jax.random.PRNGKey(0)
    k_x, k_w1, k_b1, k_w2, k_b2 = jax.random.split(key, 5)

    enc_seq = jax.random.normal(k_x, (B, S, d_word), dtype=jnp.float32)
    src_pos = jnp.arange(S, dtype=jnp.int32)[None, :].repeat(B, axis=0)  # unused in forward

    # Deterministic parameter init (PyTorch-like uniform ranges).
    lim1 = 1.0 / jnp.sqrt(d_word)
    w1 = jax.random.uniform(k_w1, (d_word, d_model), jnp.float32, -lim1, lim1)
    b1 = jax.random.uniform(k_b1, (1, d_model), jnp.float32, -lim1, lim1)
    gamma = jnp.ones((1, d_model), jnp.float32)   # BatchNorm1d weight init
    beta = jnp.zeros((1, d_model), jnp.float32)   # BatchNorm1d bias init
    lim2 = 1.0 / jnp.sqrt(d_model)
    w2 = jax.random.uniform(k_w2, (d_model, d_model), jnp.float32, -lim2, lim2)
    b2 = jax.random.uniform(k_b2, (1, d_model), jnp.float32, -lim2, lim2)

    out = word2vec_encoder(enc_seq, w1, b1, gamma, beta, w2, b2)
    out = jax.block_until_ready(out)

    ref = _reference(enc_seq, w1, b1, gamma, beta, w2, b2)
    assert out.shape == (B, d_model)
    assert jnp.allclose(out, ref, atol=1e-4, rtol=1e-4)

    print("KERNEL_OK")
</pallas_src>

<mosaic_0001>
module attributes {stable_mosaic.version = 11 : i64} {
  func.func @_w2v_encoder_kernel(%arg0: memref<2x8x32xf32, #tpu.memory_space<vmem>>, %arg1: memref<168x128xf32, #tpu.memory_space<vmem>>, %arg2: memref<2x128xf32, #tpu.memory_space<vmem>>) attributes {dimension_semantics = [], scalar_prefetch = 0 : i64, scratch_operands = 0 : i64, tpu.core_type = #tpu.core_type<tc>} {
    %c0 = arith.constant 0 : index
    %c0_0 = arith.constant 0 : index
    %c0_1 = arith.constant 0 : index
    %0 = vector.load %arg0[%c0, %c0_0, %c0_1] : memref<2x8x32xf32, #tpu.memory_space<vmem>>, vector<2x8x32xf32>
    %cst = arith.constant dense<0xFF800000> : vector<2x32xf32>
    %1 = vector.multi_reduction <maximumf>, %0, %cst [1] : vector<2x8x32xf32> to vector<2x32xf32>
    %c0_2 = arith.constant 0 : index
    %c0_3 = arith.constant 0 : index
    %2 = vector.load %arg1[%c0_2, %c0_3] : memref<168x128xf32, #tpu.memory_space<vmem>>, vector<32x128xf32>
    %c32 = arith.constant 32 : index
    %c0_4 = arith.constant 0 : index
    %3 = vector.load %arg1[%c32, %c0_4] : memref<168x128xf32, #tpu.memory_space<vmem>>, vector<128x128xf32>
    %c160 = arith.constant 160 : index
    %c0_5 = arith.constant 0 : index
    %4 = vector.load %arg1[%c160, %c0_5] : memref<168x128xf32, #tpu.memory_space<vmem>>, vector<8x128xf32>
    %5 = vector.extract_strided_slice %4 {offsets = [0, 0], sizes = [1, 128], strides = [1, 1]} : vector<8x128xf32> to vector<1x128xf32>
    %6 = vector.extract_strided_slice %4 {offsets = [1, 0], sizes = [1, 128], strides = [1, 1]} : vector<8x128xf32> to vector<1x128xf32>
    %7 = vector.extract_strided_slice %4 {offsets = [2, 0], sizes = [1, 128], strides = [1, 1]} : vector<8x128xf32> to vector<1x128xf32>
    %cst_6 = arith.constant dense<0.000000e+00> : vector<2x128xf32>
    %8 = tpu.matmul %1, %2, %cst_6 {dimension_numbers = #tpu.dot_dimension_numbers<[1], [0], [0], [1], [0, 0, 1, 1], [], []>} : vector<2x32xf32>, vector<32x128xf32>, vector<2x128xf32> -> vector<2x128xf32>
    %cst_7 = arith.constant dense<0.000000e+00> : vector<128xf32>
    %9 = vector.multi_reduction <add>, %8, %cst_7 [0] : vector<2x128xf32> to vector<128xf32>
    %10 = vector.shape_cast %9 : vector<128xf32> to vector<1x128xf32>
    %cst_8 = arith.constant 5.000000e-01 : f32
    %11 = vector.broadcast %cst_8 : f32 to vector<1x128xf32>
    %12 = arith.mulf %10, %11 : vector<1x128xf32>
    %13 = vector.broadcast %12 : vector<1x128xf32> to vector<2x128xf32>
    %14 = arith.subf %8, %13 : vector<2x128xf32>
    %15 = arith.mulf %14, %14 : vector<2x128xf32>
    %cst_9 = arith.constant dense<0.000000e+00> : vector<128xf32>
    %16 = vector.multi_reduction <add>, %15, %cst_9 [0] : vector<2x128xf32> to vector<128xf32>
    %17 = vector.shape_cast %16 : vector<128xf32> to vector<1x128xf32>
    %cst_10 = arith.constant 5.000000e-01 : f32
    %18 = vector.broadcast %cst_10 : f32 to vector<1x128xf32>
    %19 = arith.mulf %17, %18 : vector<1x128xf32>
    %cst_11 = arith.constant 9.99999974E-6 : f32
    %20 = vector.broadcast %cst_11 : f32 to vector<1x128xf32>
    %21 = arith.addf %19, %20 : vector<1x128xf32>
    %22 = math.rsqrt %21 : vector<1x128xf32>
    %23 = vector.broadcast %22 : vector<1x128xf32> to vector<2x128xf32>
    %24 = arith.mulf %14, %23 : vector<2x128xf32>
    %25 = vector.broadcast %5 : vector<1x128xf32> to vector<2x128xf32>
    %26 = arith.mulf %24, %25 : vector<2x128xf32>
    %27 = vector.broadcast %6 : vector<1x128xf32> to vector<2x128xf32>
    %28 = arith.addf %26, %27 : vector<2x128xf32>
    %cst_12 = arith.constant 0.000000e+00 : f32
    %29 = vector.broadcast %cst_12 : f32 to vector<2x128xf32>
    %30 = arith.maximumf %28, %29 : vector<2x128xf32>
    %cst_13 = arith.constant dense<0.000000e+00> : vector<2x128xf32>
    %31 = tpu.matmul %30, %3, %cst_13 {dimension_numbers = #tpu.dot_dimension_numbers<[1], [0], [0], [1], [0, 0, 1, 1], [], []>} : vector<2x128xf32>, vector<128x128xf32>, vector<2x128xf32> -> vector<2x128xf32>
    %32 = vector.broadcast %7 : vector<1x128xf32> to vector<2x128xf32>
    %33 = arith.addf %31, %32 : vector<2x128xf32>
    %c0_14 = arith.constant 0 : index
    %c0_15 = arith.constant 0 : index
    %34 = vector.load %arg2[%c0_14, %c0_15] : memref<2x128xf32, #tpu.memory_space<vmem>>, vector<2x128xf32>
    tpu.vector_store %arg2[%c0_14, %c0_15], %33 {strides = array<i32>} : memref<2x128xf32, #tpu.memory_space<vmem>>, vector<2x128xf32>,
    return
  }
}

</mosaic_0001>

<bundles_post_ra>
// kernel: tpu_custom_call.1
= control target key start
LH: loop header
LB: loop body
LE: loop exit
PB: predicated region body
PF: predicated region fallthrough
CT: control target
= control target key end

     0   :  { %7 = vsyncpa [#allocation3], 0  ;;  %s478_s0 = inlined_call_operand.hbm [shape: f32[2,8,32], index: 0, kind: input, shape index: {}]   ;;  %s479_s1 = inlined_call_operand.hbm [shape: f32[168,128], index: 1, kind: input, shape index: {}]   ;;  %s480_s2 = inlined_call_operand.hbm [shape: f32[2,128], index: 2, kind: output, shape index: {}]  }
   0x1   :  { %8 = vsyncpa [#allocation6], 0 }
   0x2   :  { %9 = vsyncpa [#allocation4], 0  ;;  %s422_s9 = smov [#allocation2]  }
   0x3   :  { %s15_s10 = sshll.u32 %s422_s9, 4  ;;  %s16_s10 = int_to_ptr.vmem [resolvable:$true] %s15_s10 }
   0x4   :  { %s364_s11 = scalar_lea.vmem %s16_s10, 256  ;;  %p369_p1 = scmp.lt.s32.totalorder %s16_s10, %s16_s10 }
   0x5   :  { %p365_p0 = scmp.ne.s32.totalorder %s16_s10, %s364_s11  ;;  %p370_p2 = scmp.lt.s32.totalorder %s364_s11, %s364_s11 }
   0x7   :  { %p371_p3 = por %p370_p2, %p369_p1 }
   0x9   :  { %p372_p4 = pnand %p371_p3, %p365_p0 }
   0xb   :  { %375 = shalt.err (!%p372_p4)
}
   0xc   :  { %s423_s12 = smov 128   ;;  %s424_s13 = smov 8  }
   0xd   :  { %21 = dma.hbm_to_vmem [thread:$0]  %s478_s0, 256, %s16_s10, [#allocation3], %s423_s12, %s423_s12, %s424_s13  }
   0xe   :  { %s425_s16 = smov [#allocation5]  }
   0xf   :  { %s27_s17 = sshll.u32 %s425_s16, 4  ;;  %s28_s17 = int_to_ptr.vmem [resolvable:$true] %s27_s17 }
  0x10   :  { %s384_s18 = scalar_lea.vmem %s28_s17, 2688  ;;  %p389_p6 = scmp.lt.s32.totalorder %s28_s17, %s28_s17 }
  0x11   :  { %p385_p5 = scmp.ne.s32.totalorder %s28_s17, %s384_s18  ;;  %p390_p7 = scmp.lt.s32.totalorder %s384_s18, %s384_s18 }
  0x13   :  { %p391_p8 = por %p390_p7, %p389_p6 }
  0x15   :  { %p392_p9 = pnand %p391_p8, %p385_p5 }
  0x17   :  { %395 = shalt.err (!%p392_p9)
}
  0x18   :  { %33 = dma.hbm_to_vmem [thread:$0]  %s479_s1, 2688, %s28_s17, [#allocation6], %s423_s12, %s423_s12, %s424_s13  }
  0x19   :  { %416 = dma.done.wait [#allocation3], 256  }
  0x1a   :  { %417 = vsyncadd [#allocation3], 4294967040 }
  0x1b   :  { %418 = dma.done.wait [#allocation6], 2688  }
  0x1c   :  { %419 = vsyncadd [#allocation6], 4294964608  ;;  %v426_v0 = vmov 0.0   ;;  %vm427_vm0 = vmmov 0   ;;  %vm42_vm1 = vcmask 261120   ;;  %v60_v1 = vld [vmem:[#allocation5 + $0x18] sm:$0xff]  ;;  %v176_v35 = vlaneseq }
  0x1d   :  { %301 = vmatprep.subr.mxu0 %v426_v0  ;;  %309 = vmatprep.mubr.msk.f32.mxu0 %vm427_vm0, %v426_v0  ;;  %v59_v2 = vld [vmem:[#allocation5 + $0x10] sm:$0xff]  ;;  %v41_v4 = vld [vmem:[#allocation2 + $0x8] sm:$0xff]  ;;  %v58_v5 = vld [vmem:[#allocation5 + $0x8] sm:$0xff]  ;;  %vm80_vm2 = vcmask 1041409   ;;  %vm154_vm3 = vcmask 1041408   ;;  %s428_s0 = smov [#allocation7]  }
  0x1e   :  { %312 = vmatprep.subr.mxu1 %v426_v0  ;;  %344 = vmatprep.mubr.msk.f32.mxu1 %vm427_vm0, %v426_v0  ;;  %v40_v3 = vld [vmem:[#allocation2] sm:$0xff]  ;;  %v50_v7 = vsel %vm42_vm1, %v41_v4, -inf  ;;  %v57_v10 = vld [vmem:[#allocation5] sm:$0xff]  ;;  %v76_v22 = vld [vmem:[#allocation5 + $0x98] sm:$0xff]  ;;  %v177_v39 = vshrl.u32 %v176_v35, 7  ;;  %s268_s1 = sshll.u32 %s428_s0, 4  ;;  %s269_s1 = int_to_ptr.vmem [resolvable:$true] %s268_s1 }
  0x1f   :  { %302 = vmatpush3.msra.mxu0 %v60_v1  ;;  %v43_v6 = vsel %vm42_vm1, %v40_v3, -inf  ;;  %v51_v9 = vrot.slane %v50_v7, 4  ;;  %313 = vmatpush3.msra.mxu1 %v76_v22  ;;  %v75_v23 = vld [vmem:[#allocation5 + $0x90] sm:$0xff]  ;;  %v74_v24 = vld [vmem:[#allocation5 + $0x88] sm:$0xff]  ;;  %v73_v25 = vld [vmem:[#allocation5 + $0x80] sm:$0xff]  ;;  %s396_s21 = scalar_lea.vmem %s269_s1, 32  ;;  %p401_p11 = scmp.lt.s32.totalorder %s269_s1, %s269_s1 }
  0x20   :  { %303 = vmatprep.subr.mxu0 %v426_v0  ;;  %v44_v8 = vrot.slane %v43_v6, 4  ;;  %314 = vmatprep.subr.mxu1 %v426_v0  ;;  %v72_v26 = vld [vmem:[#allocation5 + $0x78] sm:$0xff]  ;;  %v71_v27 = vld [vmem:[#allocation5 + $0x70] sm:$0xff]  ;;  %v70_v28 = vld [vmem:[#allocation5 + $0x68] sm:$0xff]  ;;  %v189_v40 = vsub.s32 2, %v177_v39  ;;  %v183_v1 = vsub.s32 1, %v177_v39  ;;  %p397_p10 = scmp.ne.s32.totalorder %s269_s1, %s396_s21  ;;  %p402_p12 = scmp.lt.s32.totalorder %s396_s21, %s396_s21 }
  0x21   :  { %304 = vmatpush3.msra.mxu0 %v59_v2  ;;  %v52_v12 = vmax.f32 %v50_v7, %v51_v9  ;;  %315 = vmatpush3.msra.mxu1 %v75_v23  ;;  %v69_v29 = vld [vmem:[#allocation5 + $0x60] sm:$0xff]  ;;  %v68_v30 = vld [vmem:[#allocation5 + $0x58] sm:$0xff]  ;;  %v67_v31 = vld [vmem:[#allocation5 + $0x50] sm:$0xff] }
  0x22   :  { %305 = vmatprep.subr.mxu0 %v426_v0  ;;  %v45_v11 = vmax.f32 %v43_v6, %v44_v8  ;;  %316 = vmatprep.subr.mxu1 %v426_v0  ;;  %v66_v32 = vld [vmem:[#allocation5 + $0x48] sm:$0xff]  ;;  %v65_v33 = vld [vmem:[#allocation5 + $0x40] sm:$0xff]  ;;  %v64_v34 = vld [vmem:[#allocation5 + $0x38] sm:$0xff]  ;;  %p403_p13 = por %p402_p12, %p401_p11 }
  0x23   :  { %306 = vmatpush3.msra.mxu0 %v58_v5  ;;  %v53_v14 = vrot.slane %v52_v12, 2  ;;  %317 = vmatpush3.msra.mxu1 %v74_v24  ;;  %v63_v36 = vld [vmem:[#allocation5 + $0x30] sm:$0xff]  ;;  %v62_v37 = vld [vmem:[#allocation5 + $0x28] sm:$0xff]  ;;  %v61_v38 = vld [vmem:[#allocation5 + $0x20] sm:$0xff] }
  0x24   :  { %307 = vmatprep.subr.mxu0 %v426_v0  ;;  %v46_v13 = vrot.slane %v45_v11, 2  ;;  %318 = vmatprep.subr.mxu1 %v426_v0  ;;  %v77_v41 = vld [vmem:[#allocation5 + $0xa0] sm:$0xff]  ;;  %p404_p0 = pnand %p403_p13, %p397_p10 }
  0x25   :  { %308 = vmatpush3.msra.mxu0 %v57_v10  ;;  %v54_v16 = vmax.f32 %v52_v12, %v53_v14  ;;  %319 = vmatpush3.msra.mxu1 %v73_v25  ;;  %v190_v42 = vrot.slane %v77_v41, %v189_v40  ;;  %v184_v5 = vrot.slane %v77_v41, %v183_v1 }
  0x26   :  { %v47_v15 = vmax.f32 %v45_v11, %v46_v13  ;;  %320 = vmatprep.subr.mxu1 %v426_v0 }
  0x27   :  { %v55_v18 = vrot.slane %v54_v16, 1  ;;  %321 = vmatpush3.msra.mxu1 %v72_v26 }
  0x28   :  { %v48_v17 = vrot.slane %v47_v15, 1  ;;  %322 = vmatprep.subr.mxu1 %v426_v0 }
  0x29   :  { %v56_v20 = vmax.f32 %v54_v16, %v55_v18  ;;  %323 = vmatpush3.msra.mxu1 %v71_v27 }
  0x2a   :  { %v49_v19 = vmax.f32 %v47_v15, %v48_v17  ;;  %324 = vmatprep.subr.mxu1 %v426_v0 }
  0x2b   :  { %325 = vmatpush3.msra.mxu1 %v70_v28 }
  0x2c   :  { %v81_v21 = vsel %vm80_vm2, %v56_v20, %v49_v19  ;;  %326 = vmatprep.subr.mxu1 %v426_v0 }
  0x2d   :  { %310 = vmatmul.mubr.msk.f32.vlgmr.msra.gmra.mxu0 %vm42_vm1, %v81_v21  ;;  %327 = vmatpush3.msra.mxu1 %v69_v29 }
  0x2e   :  { %328 = vmatprep.subr.mxu1 %v426_v0 }
  0x2f   :  { %329 = vmatpush3.msra.mxu1 %v68_v30 }
  0x30   :  { %330 = vmatprep.subr.mxu1 %v426_v0 }
  0x31   :  { %331 = vmatpush3.msra.mxu1 %v67_v31 }
  0x32   :  { %332 = vmatprep.subr.mxu1 %v426_v0 }
  0x33   :  { %333 = vmatpush3.msra.mxu1 %v66_v32 }
  0x34   :  { %334 = vmatprep.subr.mxu1 %v426_v0 }
  0x35   :  { %335 = vmatpush3.msra.mxu1 %v65_v33 }
  0x36   :  { %336 = vmatprep.subr.mxu1 %v426_v0 }
  0x37   :  { %337 = vmatpush3.msra.mxu1 %v64_v34 }
  0x38   :  { %338 = vmatprep.subr.mxu1 %v426_v0 }
  0x39   :  { %339 = vmatpush3.msra.mxu1 %v63_v36 }
  0x3a   :  { %340 = vmatprep.subr.mxu1 %v426_v0 }
  0x3b   :  { %341 = vmatpush3.msra.mxu1 %v62_v37 }
  0x3c   :  { %342 = vmatprep.subr.mxu1 %v426_v0  ;;  %v178_v0 = vsub.s32 0, %v177_v39 }
  0x3d   :  { %343 = vmatpush3.msra.mxu1 %v61_v38 }
  0x3e   :  { %v179_v2 = vrot.slane %v77_v41, %v178_v0 }
  0xed   :  { %v150_v43 = vpop.f32.mrf.mxu0 }
  0xee   :  { %v155_v44 = vsel %vm154_vm3, %v150_v43, 0.0 }
  0xef   :  { %v156_v45 = vrot.slane %v155_v44, 4  ;;  %v311_v46 = vpop.f32.mrf.mxu0 }
  0xf1   :  { %v157_v47 = vadd.f32 %v156_v45, %v155_v44 }
  0xf3   :  { %v158_v48 = vrot.slane %v157_v47, 2 }
  0xf5   :  { %v159_v49 = vadd.f32 %v158_v48, %v157_v47 }
  0xf7   :  { %v160_v50 = vrot.slane %v159_v49, 1 }
  0xf9   :  { %v161_v51 = vadd.f32 %v160_v50, %v159_v49 }
  0xfb   :  { %v162_v52 = vmul.f32 0.5, %v161_v51 }
  0xfd   :  { %v163_v53 = vsub.f32 %v150_v43, %v162_v52 }
  0xff   :  { %v164_v54 = vmul.f32 %v163_v53, %v163_v53 }
 0x101   :  { %v165_v55 = vsel %vm154_vm3, %v164_v54, 0.0 }
 0x102   :  { %v166_v56 = vrot.slane %v165_v55, 4 }
 0x104   :  { %v167_v57 = vadd.f32 %v166_v56, %v165_v55 }
 0x106   :  { %v168_v58 = vrot.slane %v167_v57, 2 }
 0x108   :  { %v169_v59 = vadd.f32 %v168_v58, %v167_v57 }
 0x10a   :  { %v170_v60 = vrot.slane %v169_v59, 1 }
 0x10c   :  { %v171_v61 = vadd.f32 %v170_v60, %v169_v59 }
 0x10e   :  { %v172_v62 = vmul.f32 0.5, %v171_v61 }
 0x110   :  { %v173_v63 = vadd.f32 1e-05, %v172_v62 }
 0x112   :  { %354 = vrsqrt.f32 %v173_v63 }
 0x11f   :  { %v355_v3 = vpop.eup %354 }
 0x120   :  { %v175_v4 = vmul.f32 %v355_v3, %v163_v53 }
 0x122   :  { %v180_v6 = vmul.f32 %v179_v2, %v175_v4 }
 0x124   :  { %v185_v7 = vadd.f32 %v184_v5, %v180_v6 }
 0x126   :  { %v186_v8 = vmax.f32 %v185_v7, 0.0 }
 0x128   :  { %345 = vmatmul.mubr.f32.vlgmr.msra.gmra.mxu1 %v186_v8 }
 0x1e8   :  { %v257_v9 = vpop.f32.mrf.mxu1 }
 0x1e9   :  { %v258_v10 = vadd.f32 %v257_v9, %v190_v42 }
 0x1ea   :  { %v346_v11 = vpop.f32.mrf.mxu1 }
 0x1eb   :  { %261 = vst [vmem:[#allocation7] sm:$0x3] %v258_v10 }
 0x1ec   :  { %407 = shalt.err (!%p404_p0)
}
 0x1ed   :  { %271 = dma.vmem_to_hbm [thread:$0]  %s269_s1, 32, %s480_s2, [#allocation4]  }
 0x1ee   :  { %420 = dma.done.wait [#allocation4], 32  }
 0x1ef   :  { %421 = vsyncadd [#allocation4], 4294967264 }
 0x1f0   :  { %275 = vsyncpa [#allocation3], 1 }
 0x1f1   :  { %276 = vsyncpa [#allocation6], 1 }
 0x1f2   :  { %277 = vsyncpa [#allocation4], 1 }

</bundles_post_ra>
